<compile_context>
chip_gen: v5e
topology: v5e:2x2
jax: 0.10.0
libtpu: 0.0.40
codegen_flags: <defaults>
</compile_context>

<pallas_src>
import functools

import jax
import jax.numpy as jnp
from jax import lax
from jax.experimental import pallas as pl
from jax.experimental.pallas import tpu as pltpu


def _round_up(x, m):
    return ((x + m - 1) // m) * m


def textrnn_kernel(x_ref, h0_ref, wih_ref, whh_ref, bias_ref, wout_ref, bout_ref,
                   out_ref, h_scr, *, seq_total, seq_block):
    # x_ref:    [B_pad, seq_block, n_class]   (one time-chunk of the original layout)
    # h0_ref:   [B_pad, H_pad]
    # wih_ref:  [n_class, H_pad]   (= W_ih^T, zero-padded)
    # whh_ref:  [H_pad,  H_pad]    (= W_hh^T, zero-padded)
    # bias_ref: [1, H_pad]         (= b_ih + b_hh, zero-padded)
    # wout_ref: [H_pad, C_pad]     (= W^T of the Linear, zero-padded)
    # bout_ref: [1, C_pad]         (= b, zero-padded)
    # out_ref:  [B_pad, C_pad]
    # h_scr:    [B_pad, H_pad] f32 hidden state, carried across grid steps
    s = pl.program_id(0)

    @pl.when(s == 0)
    def _init():
        h_scr[...] = h0_ref[...].astype(jnp.float32)

    B, Ts, C = x_ref.shape
    H = whh_ref.shape[1]

    # Hoisted input projection for the whole chunk: ONE MXU matmul + one fused bias add,
    # entirely off the serial h-dependency chain.
    x2d = x_ref[...].reshape(B * Ts, C)
    proj = (jnp.dot(x2d, wih_ref[...], preferred_element_type=jnp.float32)
            + bias_ref[...]).reshape(B, Ts, H)

    whh = whh_ref[...]
    needs_mask = (seq_total % seq_block) != 0  # trace-time constant (seq padding present?)

    h = h_scr[...]
    for t in range(Ts):  # static unroll: only h @ Whh -> tanh sits on the dependent chain
        h_new = jnp.tanh(
            proj[:, t, :]
            + jnp.dot(h.astype(whh.dtype), whh, preferred_element_type=jnp.float32))
        if needs_mask:
            valid = (s * seq_block + t) < seq_total
            h = jnp.where(valid, h_new, h)
        else:
            h = h_new
    h_scr[...] = h

    @pl.when(s == pl.num_programs(0) - 1)
    def _finalize():
        out_ref[...] = (jnp.dot(h.astype(wout_ref.dtype), wout_ref[...],
                                preferred_element_type=jnp.float32)
                        + bout_ref[...]).astype(out_ref.dtype)


def textrnn_forward(hidden, X, params, *, matmul_dtype=jnp.float32, seq_block=None):
    """hidden: [1, batch, n_hidden] (PyTorch h0 convention), X: [batch, seq, n_class]."""
    w_ih, w_hh, b_ih, b_hh, w_out, b_out = params
    batch, seq, n_class = X.shape
    n_hidden = w_hh.shape[0]

    # Lane/sublane-dense padded sizes (zero padding is numerically exact here).
    B_pad = _round_up(batch, 8)
    H_pad = _round_up(n_hidden, 128)
    C_pad = _round_up(n_class, 128)

    if seq_block is None:
        seq_block = min(seq, 128)          # stream X in chunks; whole seq if small
    S_pad = _round_up(seq, seq_block)
    n_blocks = S_pad // seq_block

    f32 = jnp.float32
    # Inputs / weights, padded and pre-transposed (PyTorch stores W_ih:[H,C], W_hh:[H,H],
    # Linear W:[C,H]); MXU operands optionally cast to bf16, accumulation stays f32.
    x_p = jnp.zeros((B_pad, S_pad, n_class), matmul_dtype)
    x_p = x_p.at[:batch, :seq, :].set(X.astype(matmul_dtype))
    h0_p = jnp.zeros((B_pad, H_pad), f32).at[:batch, :n_hidden].set(hidden[0].astype(f32))

    wih_p = jnp.zeros((n_class, H_pad), matmul_dtype)
    wih_p = wih_p.at[:, :n_hidden].set(w_ih.T.astype(matmul_dtype))
    whh_p = jnp.zeros((H_pad, H_pad), matmul_dtype)
    whh_p = whh_p.at[:n_hidden, :n_hidden].set(w_hh.T.astype(matmul_dtype))
    bias_p = jnp.zeros((1, H_pad), f32).at[0, :n_hidden].set((b_ih + b_hh).astype(f32))
    wout_p = jnp.zeros((H_pad, C_pad), matmul_dtype)
    wout_p = wout_p.at[:n_hidden, :n_class].set(w_out.T.astype(matmul_dtype))
    bout_p = jnp.zeros((1, C_pad), f32).at[0, :n_class].set(b_out.astype(f32))

    ins = (x_p, h0_p, wih_p, whh_p, bias_p, wout_p, bout_p)
    flops = (2 * B_pad * S_pad * n_class * H_pad          # hoisted input projection
             + 2 * B_pad * S_pad * H_pad * H_pad          # recurrence matmuls
             + 2 * B_pad * H_pad * C_pad)                 # output projection
    bytes_accessed = sum(a.size * a.dtype.itemsize for a in ins) + B_pad * C_pad * 4

    kernel = functools.partial(textrnn_kernel, seq_total=seq, seq_block=seq_block)

    out = pl.pallas_call(
        kernel,
        out_shape=jax.ShapeDtypeStruct((B_pad, C_pad), f32),
        grid=(n_blocks,),
        in_specs=[
            pl.BlockSpec((B_pad, seq_block, n_class), lambda s: (0, s, 0)),  # stream X chunks
            pl.BlockSpec((B_pad, H_pad), lambda s: (0, 0)),
            pl.BlockSpec((n_class, H_pad), lambda s: (0, 0)),
            pl.BlockSpec((H_pad, H_pad), lambda s: (0, 0)),
            pl.BlockSpec((1, H_pad), lambda s: (0, 0)),
            pl.BlockSpec((H_pad, C_pad), lambda s: (0, 0)),
            pl.BlockSpec((1, C_pad), lambda s: (0, 0)),
        ],
        out_specs=pl.BlockSpec((B_pad, C_pad), lambda s: (0, 0)),  # resident accumulator
        scratch_shapes=[pltpu.VMEM((B_pad, H_pad), f32)],          # carried hidden state
        compiler_params=pltpu.CompilerParams(
            dimension_semantics=("arbitrary",)),                   # seq is a recurrence
        cost_estimate=pl.CostEstimate(
            flops=flops,
            transcendentals=B_pad * S_pad * H_pad,
            bytes_accessed=bytes_accessed),
    )(*ins)

    return out[:batch, :n_class]


def textrnn_reference(hidden, X, params):
    """Pure-JAX reference matching PyTorch nn.RNN + Linear + b."""
    w_ih, w_hh, b_ih, b_hh, w_out, b_out = params
    x_tm = jnp.transpose(X, (1, 0, 2))
    h = hidden[0]
    for t in range(x_tm.shape[0]):
        h = jnp.tanh(x_tm[t] @ w_ih.T + b_ih + h @ w_hh.T + b_hh)
    return h @ w_out.T + b_out


if __name__ == "__main__":
    # Small shapes consistent with the module's forward.
    batch, seq, n_class, n_hidden = 2, 8, 16, 32

    key = jax.random.PRNGKey(0)
    k = jax.random.split(key, 6)
    w_ih = jax.random.normal(k[0], (n_hidden, n_class), jnp.float32) * 0.1
    w_hh = jax.random.normal(k[1], (n_hidden, n_hidden), jnp.float32) * 0.1
    b_ih = jax.random.normal(k[2], (n_hidden,), jnp.float32) * 0.1
    b_hh = jax.random.normal(k[3], (n_hidden,), jnp.float32) * 0.1
    w_out = jax.random.normal(k[4], (n_class, n_hidden), jnp.float32) * 0.1
    b_out = jnp.ones((n_class,), jnp.float32)           # self.b = torch.ones([n_class])
    params = (w_ih, w_hh, b_ih, b_hh, w_out, b_out)

    X = jax.random.normal(k[5], (batch, seq, n_class), jnp.float32)
    hidden = jnp.zeros((1, batch, n_hidden), jnp.float32)  # h0, as in the training script

    ref = textrnn_reference(hidden, X, params)

    # f32 path (exact semantics).
    out_f32 = jax.block_until_ready(textrnn_forward(hidden, X, params))
    assert out_f32.shape == (batch, n_class)
    assert jnp.allclose(out_f32, ref, atol=1e-4, rtol=1e-4), "f32 mismatch vs reference"

    # bf16-MXU path (f32 accumulation / f32 hidden state), loose tolerance.
    out_bf16 = jax.block_until_ready(
        textrnn_forward(hidden, X, params, matmul_dtype=jnp.bfloat16))
    assert out_bf16.shape == (batch, n_class)
    assert jnp.allclose(out_bf16, ref, atol=1e-1, rtol=1e-1), "bf16 mismatch vs reference"

    print("KERNEL_OK")
</pallas_src>

<mosaic_0001>
module attributes {stable_mosaic.version = 11 : i64} {
  func.func @textrnn_kernel(%arg0: i32, %arg1: memref<8x8x16xf32, #tpu.memory_space<vmem>>, %arg2: memref<8x128xf32, #tpu.memory_space<vmem>>, %arg3: memref<16x128xf32, #tpu.memory_space<vmem>>, %arg4: memref<128x128xf32, #tpu.memory_space<vmem>>, %arg5: memref<1x128xf32, #tpu.memory_space<vmem>>, %arg6: memref<128x128xf32, #tpu.memory_space<vmem>>, %arg7: memref<1x128xf32, #tpu.memory_space<vmem>>, %arg8: memref<8x128xf32, #tpu.memory_space<vmem>>, %arg9: memref<8x128xf32, #tpu.memory_space<vmem>>) attributes {dimension_semantics = [#tpu.dimension_semantics<arbitrary>], iteration_bounds = array<i64: 1>, scalar_prefetch = 0 : i64, scratch_operands = 1 : i64, tpu.core_type = #tpu.core_type<tc>, window_params = [{transform_indices = @transform_0, window_bounds = array<i64: 8, 8, 16>}, {pipeline_mode = #tpu.pipeline_mode<synchronous>, transform_indices = @transform_1, window_bounds = array<i64: 8, 128>}, {pipeline_mode = #tpu.pipeline_mode<synchronous>, transform_indices = @transform_2, window_bounds = array<i64: 16, 128>}, {pipeline_mode = #tpu.pipeline_mode<synchronous>, transform_indices = @transform_3, window_bounds = array<i64: 128, 128>}, {pipeline_mode = #tpu.pipeline_mode<synchronous>, transform_indices = @transform_4, window_bounds = array<i64: 1, 128>}, {pipeline_mode = #tpu.pipeline_mode<synchronous>, transform_indices = @transform_5, window_bounds = array<i64: 128, 128>}, {pipeline_mode = #tpu.pipeline_mode<synchronous>, transform_indices = @transform_6, window_bounds = array<i64: 1, 128>}, {pipeline_mode = #tpu.pipeline_mode<synchronous>, transform_indices = @transform_7, window_bounds = array<i64: 8, 128>}]} {
    %c0_i32 = arith.constant 0 : i32
    %0 = arith.cmpi eq, %arg0, %c0_i32 : i32
    %1 = arith.extui %0 : i1 to i32
    %c0_i32_0 = arith.constant 0 : i32
    %2 = arith.cmpi ne, %1, %c0_i32_0 : i32
    scf.if %2 {
      %c0_23 = arith.constant 0 : index
      %c0_24 = arith.constant 0 : index
      %57 = vector.load %arg2[%c0_23, %c0_24] : memref<8x128xf32, #tpu.memory_space<vmem>>, vector<8x128xf32>
      %c0_25 = arith.constant 0 : index
      %c0_26 = arith.constant 0 : index
      %58 = vector.load %arg9[%c0_25, %c0_26] : memref<8x128xf32, #tpu.memory_space<vmem>>, vector<8x128xf32>
      tpu.vector_store %arg9[%c0_25, %c0_26], %57 {strides = array<i32>} : memref<8x128xf32, #tpu.memory_space<vmem>>, vector<8x128xf32>,
    } else {
    }
    %c0 = arith.constant 0 : index
    %c0_1 = arith.constant 0 : index
    %c0_2 = arith.constant 0 : index
    %3 = vector.load %arg1[%c0, %c0_1, %c0_2] : memref<8x8x16xf32, #tpu.memory_space<vmem>>, vector<8x8x16xf32>
    %4 = vector.shape_cast %3 : vector<8x8x16xf32> to vector<64x16xf32>
    %c0_3 = arith.constant 0 : index
    %c0_4 = arith.constant 0 : index
    %5 = vector.load %arg3[%c0_3, %c0_4] : memref<16x128xf32, #tpu.memory_space<vmem>>, vector<16x128xf32>
    %cst = arith.constant dense<0.000000e+00> : vector<64x128xf32>
    %6 = tpu.matmul %4, %5, %cst {dimension_numbers = #tpu.dot_dimension_numbers<[1], [0], [0], [1], [0, 0, 1, 1], [], []>} : vector<64x16xf32>, vector<16x128xf32>, vector<64x128xf32> -> vector<64x128xf32>
    %c0_5 = arith.constant 0 : index
    %c0_6 = arith.constant 0 : index
    %7 = vector.load %arg5[%c0_5, %c0_6] : memref<1x128xf32, #tpu.memory_space<vmem>>, vector<1x128xf32>
    %8 = vector.broadcast %7 : vector<1x128xf32> to vector<64x128xf32>
    %9 = arith.addf %6, %8 : vector<64x128xf32>
    %10 = vector.shape_cast %9 : vector<64x128xf32> to vector<8x8x128xf32>
    %c0_7 = arith.constant 0 : index
    %c0_8 = arith.constant 0 : index
    %11 = vector.load %arg4[%c0_7, %c0_8] : memref<128x128xf32, #tpu.memory_space<vmem>>, vector<128x128xf32>
    %c0_9 = arith.constant 0 : index
    %c0_10 = arith.constant 0 : index
    %12 = vector.load %arg9[%c0_9, %c0_10] : memref<8x128xf32, #tpu.memory_space<vmem>>, vector<8x128xf32>
    %13 = vector.extract_strided_slice %10 {offsets = [0, 0, 0], sizes = [8, 1, 128], strides = [1, 1, 1]} : vector<8x8x128xf32> to vector<8x1x128xf32>
    %14 = vector.shape_cast %13 : vector<8x1x128xf32> to vector<8x128xf32>
    %cst_11 = arith.constant dense<0.000000e+00> : vector<8x128xf32>
    %15 = tpu.matmul %12, %11, %cst_11 {dimension_numbers = #tpu.dot_dimension_numbers<[1], [0], [0], [1], [0, 0, 1, 1], [], []>} : vector<8x128xf32>, vector<128x128xf32>, vector<8x128xf32> -> vector<8x128xf32>
    %16 = arith.addf %14, %15 : vector<8x128xf32>
    %17 = math.tanh %16 : vector<8x128xf32>
    %18 = vector.extract_strided_slice %10 {offsets = [0, 1, 0], sizes = [8, 1, 128], strides = [1, 1, 1]} : vector<8x8x128xf32> to vector<8x1x128xf32>
    %19 = vector.shape_cast %18 : vector<8x1x128xf32> to vector<8x128xf32>
    %cst_12 = arith.constant dense<0.000000e+00> : vector<8x128xf32>
    %20 = tpu.matmul %17, %11, %cst_12 {dimension_numbers = #tpu.dot_dimension_numbers<[1], [0], [0], [1], [0, 0, 1, 1], [], []>} : vector<8x128xf32>, vector<128x128xf32>, vector<8x128xf32> -> vector<8x128xf32>
    %21 = arith.addf %19, %20 : vector<8x128xf32>
    %22 = math.tanh %21 : vector<8x128xf32>
    %23 = vector.extract_strided_slice %10 {offsets = [0, 2, 0], sizes = [8, 1, 128], strides = [1, 1, 1]} : vector<8x8x128xf32> to vector<8x1x128xf32>
    %24 = vector.shape_cast %23 : vector<8x1x128xf32> to vector<8x128xf32>
    %cst_13 = arith.constant dense<0.000000e+00> : vector<8x128xf32>
    %25 = tpu.matmul %22, %11, %cst_13 {dimension_numbers = #tpu.dot_dimension_numbers<[1], [0], [0], [1], [0, 0, 1, 1], [], []>} : vector<8x128xf32>, vector<128x128xf32>, vector<8x128xf32> -> vector<8x128xf32>
    %26 = arith.addf %24, %25 : vector<8x128xf32>
    %27 = math.tanh %26 : vector<8x128xf32>
    %28 = vector.extract_strided_slice %10 {offsets = [0, 3, 0], sizes = [8, 1, 128], strides = [1, 1, 1]} : vector<8x8x128xf32> to vector<8x1x128xf32>
    %29 = vector.shape_cast %28 : vector<8x1x128xf32> to vector<8x128xf32>
    %cst_14 = arith.constant dense<0.000000e+00> : vector<8x128xf32>
    %30 = tpu.matmul %27, %11, %cst_14 {dimension_numbers = #tpu.dot_dimension_numbers<[1], [0], [0], [1], [0, 0, 1, 1], [], []>} : vector<8x128xf32>, vector<128x128xf32>, vector<8x128xf32> -> vector<8x128xf32>
    %31 = arith.addf %29, %30 : vector<8x128xf32>
    %32 = math.tanh %31 : vector<8x128xf32>
    %33 = vector.extract_strided_slice %10 {offsets = [0, 4, 0], sizes = [8, 1, 128], strides = [1, 1, 1]} : vector<8x8x128xf32> to vector<8x1x128xf32>
    %34 = vector.shape_cast %33 : vector<8x1x128xf32> to vector<8x128xf32>
    %cst_15 = arith.constant dense<0.000000e+00> : vector<8x128xf32>
    %35 = tpu.matmul %32, %11, %cst_15 {dimension_numbers = #tpu.dot_dimension_numbers<[1], [0], [0], [1], [0, 0, 1, 1], [], []>} : vector<8x128xf32>, vector<128x128xf32>, vector<8x128xf32> -> vector<8x128xf32>
    %36 = arith.addf %34, %35 : vector<8x128xf32>
    %37 = math.tanh %36 : vector<8x128xf32>
    %38 = vector.extract_strided_slice %10 {offsets = [0, 5, 0], sizes = [8, 1, 128], strides = [1, 1, 1]} : vector<8x8x128xf32> to vector<8x1x128xf32>
    %39 = vector.shape_cast %38 : vector<8x1x128xf32> to vector<8x128xf32>
    %cst_16 = arith.constant dense<0.000000e+00> : vector<8x128xf32>
    %40 = tpu.matmul %37, %11, %cst_16 {dimension_numbers = #tpu.dot_dimension_numbers<[1], [0], [0], [1], [0, 0, 1, 1], [], []>} : vector<8x128xf32>, vector<128x128xf32>, vector<8x128xf32> -> vector<8x128xf32>
    %41 = arith.addf %39, %40 : vector<8x128xf32>
    %42 = math.tanh %41 : vector<8x128xf32>
    %43 = vector.extract_strided_slice %10 {offsets = [0, 6, 0], sizes = [8, 1, 128], strides = [1, 1, 1]} : vector<8x8x128xf32> to vector<8x1x128xf32>
    %44 = vector.shape_cast %43 : vector<8x1x128xf32> to vector<8x128xf32>
    %cst_17 = arith.constant dense<0.000000e+00> : vector<8x128xf32>
    %45 = tpu.matmul %42, %11, %cst_17 {dimension_numbers = #tpu.dot_dimension_numbers<[1], [0], [0], [1], [0, 0, 1, 1], [], []>} : vector<8x128xf32>, vector<128x128xf32>, vector<8x128xf32> -> vector<8x128xf32>
    %46 = arith.addf %44, %45 : vector<8x128xf32>
    %47 = math.tanh %46 : vector<8x128xf32>
    %48 = vector.extract_strided_slice %10 {offsets = [0, 7, 0], sizes = [8, 1, 128], strides = [1, 1, 1]} : vector<8x8x128xf32> to vector<8x1x128xf32>
    %49 = vector.shape_cast %48 : vector<8x1x128xf32> to vector<8x128xf32>
    %cst_18 = arith.constant dense<0.000000e+00> : vector<8x128xf32>
    %50 = tpu.matmul %47, %11, %cst_18 {dimension_numbers = #tpu.dot_dimension_numbers<[1], [0], [0], [1], [0, 0, 1, 1], [], []>} : vector<8x128xf32>, vector<128x128xf32>, vector<8x128xf32> -> vector<8x128xf32>
    %51 = arith.addf %49, %50 : vector<8x128xf32>
    %52 = math.tanh %51 : vector<8x128xf32>
    %c0_19 = arith.constant 0 : index
    %c0_20 = arith.constant 0 : index
    %53 = vector.load %arg9[%c0_19, %c0_20] : memref<8x128xf32, #tpu.memory_space<vmem>>, vector<8x128xf32>
    tpu.vector_store %arg9[%c0_19, %c0_20], %52 {strides = array<i32>} : memref<8x128xf32, #tpu.memory_space<vmem>>, vector<8x128xf32>,
    %c0_i32_21 = arith.constant 0 : i32
    %54 = arith.cmpi eq, %arg0, %c0_i32_21 : i32
    %55 = arith.extui %54 : i1 to i32
    %c0_i32_22 = arith.constant 0 : i32
    %56 = arith.cmpi ne, %55, %c0_i32_22 : i32
    scf.if %56 {
      %c0_23 = arith.constant 0 : index
      %c0_24 = arith.constant 0 : index
      %57 = vector.load %arg6[%c0_23, %c0_24] : memref<128x128xf32, #tpu.memory_space<vmem>>, vector<128x128xf32>
      %cst_25 = arith.constant dense<0.000000e+00> : vector<8x128xf32>
      %58 = tpu.matmul %52, %57, %cst_25 {dimension_numbers = #tpu.dot_dimension_numbers<[1], [0], [0], [1], [0, 0, 1, 1], [], []>} : vector<8x128xf32>, vector<128x128xf32>, vector<8x128xf32> -> vector<8x128xf32>
      %c0_26 = arith.constant 0 : index
      %c0_27 = arith.constant 0 : index
      %59 = vector.load %arg7[%c0_26, %c0_27] : memref<1x128xf32, #tpu.memory_space<vmem>>, vector<1x128xf32>
      %60 = vector.broadcast %59 : vector<1x128xf32> to vector<8x128xf32>
      %61 = arith.addf %58, %60 : vector<8x128xf32>
      %c0_28 = arith.constant 0 : index
      %c0_29 = arith.constant 0 : index
      %62 = vector.load %arg8[%c0_28, %c0_29] : memref<8x128xf32, #tpu.memory_space<vmem>>, vector<8x128xf32>
      tpu.vector_store %arg8[%c0_28, %c0_29], %61 {strides = array<i32>} : memref<8x128xf32, #tpu.memory_space<vmem>>, vector<8x128xf32>,
    } else {
    }
    return
  }
  func.func @transform_0(%arg0: i32) -> (i32, i32, i32) {
    %c0_i32 = arith.constant 0 : i32
    %c0_i32_0 = arith.constant 0 : i32
    %c0_i32_1 = arith.constant 0 : i32
    return %c0_i32, %arg0, %c0_i32_0 : i32, i32, i32
  }
  func.func @transform_1(%arg0: i32) -> (i32, i32) {
    %c0_i32 = arith.constant 0 : i32
    %c0_i32_0 = arith.constant 0 : i32
    %c0_i32_1 = arith.constant 0 : i32
    return %c0_i32, %c0_i32_0 : i32, i32
  }
  func.func @transform_2(%arg0: i32) -> (i32, i32) {
    %c0_i32 = arith.constant 0 : i32
    %c0_i32_0 = arith.constant 0 : i32
    %c0_i32_1 = arith.constant 0 : i32
    return %c0_i32, %c0_i32_0 : i32, i32
  }
  func.func @transform_3(%arg0: i32) -> (i32, i32) {
    %c0_i32 = arith.constant 0 : i32
    %c0_i32_0 = arith.constant 0 : i32
    %c0_i32_1 = arith.constant 0 : i32
    return %c0_i32, %c0_i32_0 : i32, i32
  }
  func.func @transform_4(%arg0: i32) -> (i32, i32) {
    %c0_i32 = arith.constant 0 : i32
    %c0_i32_0 = arith.constant 0 : i32
    %c0_i32_1 = arith.constant 0 : i32
    return %c0_i32, %c0_i32_0 : i32, i32
  }
  func.func @transform_5(%arg0: i32) -> (i32, i32) {
    %c0_i32 = arith.constant 0 : i32
    %c0_i32_0 = arith.constant 0 : i32
    %c0_i32_1 = arith.constant 0 : i32
    return %c0_i32, %c0_i32_0 : i32, i32
  }
  func.func @transform_6(%arg0: i32) -> (i32, i32) {
    %c0_i32 = arith.constant 0 : i32
    %c0_i32_0 = arith.constant 0 : i32
    %c0_i32_1 = arith.constant 0 : i32
    return %c0_i32, %c0_i32_0 : i32, i32
  }
  func.func @transform_7(%arg0: i32) -> (i32, i32) {
    %c0_i32 = arith.constant 0 : i32
    %c0_i32_0 = arith.constant 0 : i32
    %c0_i32_1 = arith.constant 0 : i32
    return %c0_i32, %c0_i32_0 : i32, i32
  }
}

</mosaic_0001>

<bundles_post_ra>
// kernel: tpu_custom_call.1
= control target key start
LH: loop header
LB: loop body
LE: loop exit
PB: predicated region body
PF: predicated region fallthrough
CT: control target
= control target key end

     0   :  { %12 = vsyncpa [#allocation4], 0  ;;  %s1570_s0 = inlined_call_operand.hbm [shape: f32[8,8,16], index: 0, kind: input, shape index: {}]   ;;  %s1571_s1 = inlined_call_operand.hbm [shape: f32[8,128], index: 1, kind: input, shape index: {}]   ;;  %s1572_s2 = inlined_call_operand.hbm [shape: f32[16,128], index: 2, kind: input, shape index: {}]   ;;  %s1573_s3 = inlined_call_operand.hbm [shape: f32[128,128], index: 3, kind: input, shape index: {}]   ;;  %s1574_s4 = inlined_call_operand.vmem [shape: f32[1,128], index: 4, kind: input, shape index: {}]   ;;  %s1575_s5 = inlined_call_operand.hbm [shape: f32[128,128], index: 5, kind: input, shape index: {}]   ;;  %s1576_s6 = inlined_call_operand.vmem [shape: f32[1,128], index: 6, kind: input, shape index: {}]   ;;  %s1577_s7 = inlined_call_operand.hbm [shape: f32[8,128], index: 7, kind: output, shape index: {}]  }
   0x1   :  { %13 = vsyncpa [#allocation7], 0 }
   0x2   :  { %14 = vsyncpa [#allocation10], 0  ;;  %s34_s26 = sshll.u32 %s1571_s1, 4  ;;  %s35_s26 = int_to_ptr.hbm [resolvable:$true] %s34_s26 }
   0x3   :  { %15 = vsyncpa [#allocation5], 0  ;;  %s1191_s27 = smov [#allocation6]   ;;  %s57_s8 = sshll.u32 %s1573_s3, 4  ;;  %s58_s8 = int_to_ptr.hbm [resolvable:$true] %s57_s8 }
   0x4   :  { %s36_s28 = sshll.u32 %s1191_s27, 4  ;;  %s1192_s9 = smov [#allocation9]   ;;  %s37_s28 = int_to_ptr.vmem [resolvable:$true] %s36_s28 }
   0x5   :  { %39 = dma.hbm_to_vmem [thread:$0]  %s35_s26, 128, %s37_s28, [#allocation7]  }
   0x6   :  { %s59_s10 = sshll.u32 %s1192_s9, 4  ;;  %s20_s13 = sshll.u32 %s1570_s0, 4  ;;  %s60_s10 = int_to_ptr.vmem [resolvable:$true] %s59_s10  ;;  %s21_s13 = int_to_ptr.hbm [resolvable:$true] %s20_s13 }
   0x7   :  { %s1193_s1 = smov 128   ;;  %s1194_s14 = smov 8  }
   0x8   :  { %65 = dma.hbm_to_vmem [thread:$0]  %s58_s8, 2048, %s60_s10, [#allocation10], %s1193_s1, %s1193_s1, %s1194_s14  }
   0x9   :  { %s44_s17 = sshll.u32 %s1572_s2, 4  ;;  %s1195_s18 = smov [#allocation3]   ;;  %s45_s17 = int_to_ptr.hbm [resolvable:$true] %s44_s17 }
   0xa   :  { %s22_s19 = sshll.u32 %s1195_s18, 4  ;;  %s1196_s3 = smov [#allocation8]   ;;  %s23_s19 = int_to_ptr.vmem [resolvable:$true] %s22_s19 }
   0xb   :  { %28 = dma.hbm_to_vmem [thread:$0]  %s21_s13, 1024, %s23_s19, [#allocation4], %s1193_s1, %s1193_s1, %s1194_s14  }
   0xc   :  { %s46_s20 = sshll.u32 %s1196_s3, 4  ;;  %s72_s0 = sshll.u32 %s1575_s5, 4  ;;  %s47_s20 = int_to_ptr.vmem [resolvable:$true] %s46_s20  ;;  %s73_s0 = int_to_ptr.hbm [resolvable:$true] %s72_s0 }
   0xd   :  { %52 = dma.hbm_to_vmem [thread:$0]  %s45_s17, 256, %s47_s20, [#allocation7], %s1193_s1, %s1193_s1, %s1194_s14  }
   0xe   :  { %s1197_s23 = smov [#allocation11]  }
   0xf   :  { %s74_s24 = sshll.u32 %s1197_s23, 4  ;;  %s75_s24 = int_to_ptr.vmem [resolvable:$true] %s74_s24 }
  0x10   :  { %80 = dma.hbm_to_vmem [thread:$0]  %s73_s0, 2048, %s75_s24, [#allocation10], %s1193_s1, %s1193_s1, %s1194_s14  }
  0x11   :  { %1183 = dma.done.wait [#allocation4], 1024  }
  0x12   :  { %1184 = vsyncadd [#allocation4], 4294966272 }
  0x13   :  { %1185 = dma.done.wait [#allocation7], 384  }
  0x14   :  { %1186 = vsyncadd [#allocation7], 4294966912 }
  0x15   :  { %1187 = dma.done.wait [#allocation10], 4096  }
  0x16   :  { %1188 = vsyncadd [#allocation10], 4294963200  ;;  %v118_v0 = vld [vmem:[#allocation8 + $0x8] sm:$0xff]  ;;  %v117_v2 = vld [vmem:[#allocation8] sm:$0xff]  ;;  %vm123_vm0 = vcmask 130048   ;;  %vm267_vm1 = vcmask 1041409  }
  0x17   :  { %v1254_v1 = vld [vmem:[#allocation9 + $0x78] sm:$0xff]  ;;  %162 = vmatpush.msra.mxu0 %v118_v0  ;;  %v1257_v3 = vld [vmem:[#allocation9 + $0x70] sm:$0xff]  ;;  %v109_v4 = vld [vmem:[#allocation3] sm:$0xff]  ;;  %vm270_vm2 = vcmask 1042434   ;;  %vm273_vm3 = vcmask 1043459   ;;  %vm276_vm4 = vcmask 1044484  }
  0x18   :  { %206 = vmatpush.msra.mxu1 %v1254_v1  ;;  %v1259_v5 = vld [vmem:[#allocation9 + $0x68] sm:$0xff]  ;;  %288 = vmatpush.msra.mxu2 %v1254_v1  ;;  %v1265_v6 = vld [vmem:[#allocation9 + $0x60] sm:$0xff]  ;;  %v1270_v7 = vld [vmem:[#allocation9 + $0x58] sm:$0xff]  ;;  %vm279_vm5 = vcmask 1045509   ;;  %vm282_vm6 = vcmask 1046534   ;;  %vm285_vm7 = vcmask 1047559  }
  0x19   :  { %363 = vmatpush.msra.mxu3 %v1254_v1  ;;  %163 = vmatpush.msra.mxu0 %v117_v2  ;;  %v1275_v8 = vld [vmem:[#allocation6] sm:$0xff]  ;;  %v1278_v9 = vld [vmem:[#allocation9 + $0x50] sm:$0xff]  ;;  %v1291_v12 = vld [vmem:[#allocation9 + $0x40] sm:$0xff]  ;;  %s1198_s26 = smov [#allocation12]   ;;  %s881_s30 = sshll.u32 %s1577_s7, 4  ;;  %s882_s30 = int_to_ptr.hbm [resolvable:$true] %s881_s30 }
  0x1a   :  { %207 = vmatpush.msra.mxu1 %v1257_v3  ;;  %893 = vmatmul.msk.f32.vlgmr.msra.gmra.mxu0 %vm123_vm0, %v109_v4  ;;  %v110_v10 = vld [vmem:[#allocation3 + $0x8] sm:$0xff]  ;;  %v1284_v11 = vld [vmem:[#allocation9 + $0x48] sm:$0xff]  ;;  %v1296_v13 = vld [vmem:[#allocation9 + $0x38] sm:$0xff]  ;;  %s879_s27 = sshll.u32 %s1198_s26, 4  ;;  %s880_s27 = int_to_ptr.vmem [resolvable:$true] %s879_s27 }
  0x1b   :  { %289 = vmatpush.msra.mxu2 %v1257_v3  ;;  %364 = vmatpush.msra.mxu3 %v1257_v3  ;;  %v1302_v14 = vld [vmem:[#allocation9 + $0x30] sm:$0xff]  ;;  %v111_v15 = vld [vmem:[#allocation3 + $0x10] sm:$0xff]  ;;  %v1308_v16 = vld [vmem:[#allocation9 + $0x28] sm:$0xff] }
  0x1c   :  { %208 = vmatpush.msra.mxu1 %v1259_v5  ;;  %663 = vmatpush.msrb.mxu0 %v1254_v1  ;;  %v1315_v17 = vld [vmem:[#allocation9 + $0x20] sm:$0xff]  ;;  %v1320_v18 = vld [vmem:[#allocation9 + $0x18] sm:$0xff]  ;;  %v1326_v19 = vld [vmem:[#allocation9 + $0x10] sm:$0xff] }
  0x1d   :  { %290 = vmatpush.msra.mxu2 %v1259_v5  ;;  %365 = vmatpush.msra.mxu3 %v1259_v5  ;;  %v112_v20 = vld [vmem:[#allocation3 + $0x18] sm:$0xff]  ;;  %v1332_v21 = vld [vmem:[#allocation9 + $0x8] sm:$0xff]  ;;  %v114_v24 = vld [vmem:[#allocation3 + $0x28] sm:$0xff] }
  0x1e   :  { %209 = vmatpush.msra.mxu1 %v1265_v6  ;;  %664 = vmatpush.msrb.mxu0 %v1257_v3  ;;  %v1339_v22 = vld [vmem:[#allocation9] sm:$0xff]  ;;  %v113_v23 = vld [vmem:[#allocation3 + $0x20] sm:$0xff]  ;;  %v115_v25 = vld [vmem:[#allocation3 + $0x30] sm:$0xff] }
  0x1f   :  { %291 = vmatpush.msra.mxu2 %v1265_v6  ;;  %366 = vmatpush.msra.mxu3 %v1265_v6  ;;  %v116_v26 = vld [vmem:[#allocation3 + $0x38] sm:$0xff]  ;;  %v909_v33 = vld [vmem:[%s1574_s4] ss:$0 sm:$0xff] }
  0x20   :  { %210 = vmatpush.msra.mxu1 %v1270_v7  ;;  %665 = vmatpush.msrb.mxu0 %v1259_v5 }
  0x21   :  { %292 = vmatpush.msra.mxu2 %v1270_v7  ;;  %367 = vmatpush.msra.mxu3 %v1270_v7 }
  0x22   :  { %211 = vmatpush.msra.mxu1 %v1278_v9  ;;  %894 = vmatmul.msk.f32.gmra.mxu0 %vm123_vm0, %v110_v10 }
  0x23   :  { %293 = vmatpush.msra.mxu2 %v1278_v9  ;;  %368 = vmatpush.msra.mxu3 %v1278_v9 }
  0x24   :  { %212 = vmatpush.msra.mxu1 %v1284_v11  ;;  %666 = vmatpush.msrb.mxu0 %v1265_v6 }
  0x25   :  { %294 = vmatpush.msra.mxu2 %v1284_v11  ;;  %369 = vmatpush.msra.mxu3 %v1284_v11 }
  0x26   :  { %213 = vmatpush.msra.mxu1 %v1291_v12  ;;  %667 = vmatpush.msrb.mxu0 %v1270_v7 }
  0x27   :  { %295 = vmatpush.msra.mxu2 %v1291_v12  ;;  %370 = vmatpush.msra.mxu3 %v1291_v12 }
  0x28   :  { %214 = vmatpush.msra.mxu1 %v1296_v13  ;;  %668 = vmatpush.msrb.mxu0 %v1278_v9 }
  0x29   :  { %296 = vmatpush.msra.mxu2 %v1296_v13  ;;  %371 = vmatpush.msra.mxu3 %v1296_v13 }
  0x2a   :  { %215 = vmatpush.msra.mxu1 %v1302_v14  ;;  %895 = vmatmul.msk.f32.gmra.mxu0 %vm123_vm0, %v111_v15 }
  0x2b   :  { %297 = vmatpush.msra.mxu2 %v1302_v14  ;;  %372 = vmatpush.msra.mxu3 %v1302_v14 }
  0x2c   :  { %216 = vmatpush.msra.mxu1 %v1308_v16  ;;  %669 = vmatpush.msrb.mxu0 %v1284_v11 }
  0x2d   :  { %298 = vmatpush.msra.mxu2 %v1308_v16  ;;  %373 = vmatpush.msra.mxu3 %v1308_v16 }
  0x2e   :  { %217 = vmatpush.msra.mxu1 %v1315_v17  ;;  %670 = vmatpush.msrb.mxu0 %v1291_v12 }
  0x2f   :  { %299 = vmatpush.msra.mxu2 %v1315_v17  ;;  %374 = vmatpush.msra.mxu3 %v1315_v17 }
  0x30   :  { %218 = vmatpush.msra.mxu1 %v1320_v18  ;;  %671 = vmatpush.msrb.mxu0 %v1296_v13 }
  0x31   :  { %300 = vmatpush.msra.mxu2 %v1320_v18  ;;  %375 = vmatpush.msra.mxu3 %v1320_v18 }
  0x32   :  { %219 = vmatpush.msra.mxu1 %v1326_v19  ;;  %896 = vmatmul.msk.f32.gmra.mxu0 %vm123_vm0, %v112_v20 }
  0x33   :  { %301 = vmatpush.msra.mxu2 %v1326_v19  ;;  %376 = vmatpush.msra.mxu3 %v1326_v19 }
  0x34   :  { %220 = vmatpush.msra.mxu1 %v1332_v21  ;;  %672 = vmatpush.msrb.mxu0 %v1302_v14 }
  0x35   :  { %302 = vmatpush.msra.mxu2 %v1332_v21  ;;  %377 = vmatpush.msra.mxu3 %v1332_v21 }
  0x36   :  { %221 = vmatpush.msra.mxu1 %v1339_v22  ;;  %673 = vmatpush.msrb.mxu0 %v1308_v16 }
  0x37   :  { %222 = vmatmul.f32.vlgmr.msra.gmra.mxu1 %v1275_v8  ;;  %303 = vmatpush.msra.mxu2 %v1339_v22 }
  0x38   :  { %378 = vmatpush.msra.mxu3 %v1339_v22  ;;  %438 = vmatpush.msrb.mxu1 %v1254_v1 }
  0x39   :  { %513 = vmatpush.msrb.mxu2 %v1254_v1  ;;  %674 = vmatpush.msrb.mxu0 %v1315_v17 }
  0x3a   :  { %588 = vmatpush.msrb.mxu3 %v1254_v1  ;;  %439 = vmatpush.msrb.mxu1 %v1257_v3 }
  0x3b   :  { %897 = vmatmul.msk.f32.gmra.mxu0 %vm123_vm0, %v113_v23  ;;  %514 = vmatpush.msrb.mxu2 %v1257_v3 }
  0x3c   :  { %440 = vmatpush.msrb.mxu1 %v1259_v5  ;;  %589 = vmatpush.msrb.mxu3 %v1257_v3 }
  0x3d   :  { %515 = vmatpush.msrb.mxu2 %v1259_v5  ;;  %675 = vmatpush.msrb.mxu0 %v1320_v18 }
  0x3e   :  { %441 = vmatpush.msrb.mxu1 %v1265_v6  ;;  %590 = vmatpush.msrb.mxu3 %v1259_v5 }
  0x3f   :  { %516 = vmatpush.msrb.mxu2 %v1265_v6  ;;  %676 = vmatpush.msrb.mxu0 %v1326_v19 }
  0x40   :  { %442 = vmatpush.msrb.mxu1 %v1270_v7  ;;  %591 = vmatpush.msrb.mxu3 %v1265_v6 }
  0x41   :  { %517 = vmatpush.msrb.mxu2 %v1270_v7  ;;  %677 = vmatpush.msrb.mxu0 %v1332_v21 }
  0x42   :  { %443 = vmatpush.msrb.mxu1 %v1278_v9  ;;  %592 = vmatpush.msrb.mxu3 %v1270_v7 }
  0x43   :  { %898 = vmatmul.msk.f32.gmra.mxu0 %vm123_vm0, %v114_v24  ;;  %518 = vmatpush.msrb.mxu2 %v1278_v9 }
  0x44   :  { %444 = vmatpush.msrb.mxu1 %v1284_v11  ;;  %593 = vmatpush.msrb.mxu3 %v1278_v9 }
  0x45   :  { %519 = vmatpush.msrb.mxu2 %v1284_v11  ;;  %678 = vmatpush.msrb.mxu0 %v1339_v22 }
  0x46   :  { %445 = vmatpush.msrb.mxu1 %v1291_v12  ;;  %594 = vmatpush.msrb.mxu3 %v1284_v11 }
  0x47   :  { %520 = vmatpush.msrb.mxu2 %v1291_v12 }
  0x48   :  { %446 = vmatpush.msrb.mxu1 %v1296_v13  ;;  %595 = vmatpush.msrb.mxu3 %v1291_v12 }
  0x49   :  { %521 = vmatpush.msrb.mxu2 %v1296_v13 }
  0x4a   :  { %447 = vmatpush.msrb.mxu1 %v1302_v14  ;;  %596 = vmatpush.msrb.mxu3 %v1296_v13 }
  0x4b   :  { %899 = vmatmul.msk.f32.gmra.mxu0 %vm123_vm0, %v115_v25  ;;  %522 = vmatpush.msrb.mxu2 %v1302_v14 }
  0x4c   :  { %448 = vmatpush.msrb.mxu1 %v1308_v16  ;;  %597 = vmatpush.msrb.mxu3 %v1302_v14 }
  0x4d   :  { %523 = vmatpush.msrb.mxu2 %v1308_v16 }
  0x4e   :  { %449 = vmatpush.msrb.mxu1 %v1315_v17  ;;  %598 = vmatpush.msrb.mxu3 %v1308_v16 }
  0x4f   :  { %524 = vmatpush.msrb.mxu2 %v1315_v17 }
  0x50   :  { %450 = vmatpush.msrb.mxu1 %v1320_v18  ;;  %599 = vmatpush.msrb.mxu3 %v1315_v17 }
  0x51   :  { %525 = vmatpush.msrb.mxu2 %v1320_v18 }
  0x52   :  { %451 = vmatpush.msrb.mxu1 %v1326_v19  ;;  %600 = vmatpush.msrb.mxu3 %v1320_v18 }
  0x53   :  { %900 = vmatmul.msk.f32.gmra.mxu0 %vm123_vm0, %v116_v26  ;;  %526 = vmatpush.msrb.mxu2 %v1326_v19 }
  0x54   :  { %452 = vmatpush.msrb.mxu1 %v1332_v21  ;;  %601 = vmatpush.msrb.mxu3 %v1326_v19 }
  0x55   :  { %527 = vmatpush.msrb.mxu2 %v1332_v21 }
  0x56   :  { %453 = vmatpush.msrb.mxu1 %v1339_v22  ;;  %602 = vmatpush.msrb.mxu3 %v1332_v21 }
  0x57   :  { %528 = vmatpush.msrb.mxu2 %v1339_v22 }
  0x58   :  { %738 = vmatpush.msra.mxu1 %v1254_v1  ;;  %603 = vmatpush.msrb.mxu3 %v1339_v22 }
  0x5a   :  { %739 = vmatpush.msra.mxu1 %v1257_v3 }
  0x5c   :  { %740 = vmatpush.msra.mxu1 %v1259_v5 }
  0x5e   :  { %741 = vmatpush.msra.mxu1 %v1265_v6 }
  0x60   :  { %742 = vmatpush.msra.mxu1 %v1270_v7 }
  0x62   :  { %743 = vmatpush.msra.mxu1 %v1278_v9 }
  0x64   :  { %744 = vmatpush.msra.mxu1 %v1284_v11 }
  0x66   :  { %745 = vmatpush.msra.mxu1 %v1291_v12 }
  0x68   :  { %746 = vmatpush.msra.mxu1 %v1296_v13 }
  0x6a   :  { %747 = vmatpush.msra.mxu1 %v1302_v14 }
  0x6c   :  { %748 = vmatpush.msra.mxu1 %v1308_v16 }
  0x6e   :  { %749 = vmatpush.msra.mxu1 %v1315_v17 }
  0x70   :  { %750 = vmatpush.msra.mxu1 %v1320_v18 }
  0x72   :  { %751 = vmatpush.msra.mxu1 %v1326_v19 }
  0x74   :  { %752 = vmatpush.msra.mxu1 %v1332_v21 }
  0x76   :  { %753 = vmatpush.msra.mxu1 %v1339_v22 }
  0x97   :  { %v165_v27 = vpop.f32.mrf.mxu0 }
  0x98   :  { %v1434_v41 = vadd.f32 %v909_v33, %v165_v27 }
  0x9f   :  { %v168_v28 = vpop.f32.mrf.mxu0 }
  0xa0   :  { %v1428_v35 = vadd.f32 %v909_v33, %v168_v28 }
  0xa7   :  { %v171_v29 = vpop.f32.mrf.mxu0 }
  0xa8   :  { %v1431_v39 = vadd.f32 %v909_v33, %v171_v29 }
  0xaf   :  { %v174_v30 = vpop.f32.mrf.mxu0 }
  0xb0   :  { %v1438_v45 = vadd.f32 %v909_v33, %v174_v30 }
  0xb4   :  { %v223_v32 = vpop.f32.mrf.mxu1 }
  0xb5   :  { %v227_v34 = vrot.slane %v223_v32, 1  ;;  %v228_v36 = vrot.slane %v223_v32, 2  ;;  %v229_v42 = vrot.slane %v223_v32, 3  ;;  %v230_v44 = vrot.slane %v223_v32, 4 }
  0xb6   :  { %v242_v46 = vadd.f32 %v223_v32, %v1434_v41  ;;  %v231_v48 = vrot.slane %v223_v32, 5  ;;  %v232_v50 = vrot.slane %v223_v32, 6  ;;  %v233_v62 = vrot.slane %v223_v32, 7 }
  0xb7   :  { %v243_v38 = vadd.f32 %v227_v34, %v1428_v35  ;;  %v244_v40 = vadd.f32 %v228_v36, %v1431_v39  ;;  %v245_v52 = vadd.f32 %v229_v42, %v1438_v45 }
  0xb8   :  { %v177_v31 = vpop.f32.mrf.mxu0 }
  0xb9   :  { %911 = vtanh.f32 %v243_v38  ;;  %v1436_v43 = vadd.f32 %v909_v33, %v177_v31 }
  0xba   :  { %913 = vtanh.f32 %v244_v40 }
  0xbb   :  { %v246_v53 = vadd.f32 %v230_v44, %v1436_v43  ;;  %915 = vtanh.f32 %v242_v46 }
  0xbc   :  { %917 = vtanh.f32 %v245_v52 }
  0xbd   :  { %919 = vtanh.f32 %v246_v53 }
  0xbf   :  { %v912_v54 = vpop.eup %911 }
  0xc0   :  { %v180_v37 = vpop.f32.mrf.mxu0  ;;  %v914_v57 = vpop.eup %913  ;;  %v266_v58 = vrot.slane %v912_v54, 7 }
  0xc1   :  { %v1441_v47 = vadd.f32 %v909_v33, %v180_v37  ;;  %v916_v60 = vpop.eup %915  ;;  %v269_v63 = vrot.slane %v914_v57, 6 }
  0xc2   :  { %v268_v0 = vsel %vm267_vm1, %v266_v58, %v916_v60  ;;  %v918_v1 = vpop.eup %917 }
  0xc3   :  { %v247_v55 = vadd.f32 %v231_v48, %v1441_v47  ;;  %v920_v3 = vpop.eup %919  ;;  %v271_v5 = vsel %vm270_vm2, %v269_v63, %v268_v0  ;;  %v272_v7 = vrot.slane %v918_v1, 5 }
  0xc4   :  { %v275_v8 = vrot.slane %v920_v3, 4 }
  0xc5   :  { %921 = vtanh.f32 %v247_v55  ;;  %v274_v9 = vsel %vm273_vm3, %v272_v7, %v271_v5 }
  0xc6   :  { %v277_v13 = vsel %vm276_vm4, %v275_v8, %v274_v9 }
  0xc8   :  { %v183_v49 = vpop.f32.mrf.mxu0 }
  0xc9   :  { %v1443_v51 = vadd.f32 %v909_v33, %v183_v49 }
  0xcb   :  { %v248_v56 = vadd.f32 %v232_v50, %v1443_v51  ;;  %v922_v4 = vpop.eup %921 }
  0xcc   :  { %v278_v10 = vrot.slane %v922_v4, 3 }
  0xcd   :  { %923 = vtanh.f32 %v248_v56 }
  0xce   :  { %v280_v14 = vsel %vm279_vm5, %v278_v10, %v277_v13 }
  0xd0   :  { %v186_v59 = vpop.f32.mrf.mxu0 }
  0xd1   :  { %v1449_v61 = vadd.f32 %v909_v33, %v186_v59 }
  0xd3   :  { %v249_v2 = vadd.f32 %v233_v62, %v1449_v61  ;;  %v924_v6 = vpop.eup %923 }
  0xd4   :  { %v281_v11 = vrot.slane %v924_v6, 2 }
  0xd5   :  { %925 = vtanh.f32 %v249_v2 }
  0xd6   :  { %v283_v16 = vsel %vm282_vm6, %v281_v11, %v280_v14 }
  0xdb   :  { %v926_v12 = vpop.eup %925 }
  0xdc   :  { %v284_v15 = vrot.slane %v926_v12, 1 }
  0xde   :  { %v286_v17 = vsel %vm285_vm7, %v284_v15, %v283_v16 }
  0xdf   :  { %304 = vmatmul.f32.vlgmr.msra.gmra.mxu2 %v286_v17 }
 0x162   :  { %v305_v18 = vpop.f32.mrf.mxu2 }
 0x163   :  { %v309_v19 = vrot.slane %v305_v18, 7  ;;  %v310_v20 = vrot.slane %v305_v18, 1  ;;  %v325_v21 = vadd.f32 %v305_v18, %v1428_v35  ;;  %v311_v22 = vrot.slane %v305_v18, 2 }
 0x164   :  { %v312_v23 = vrot.slane %v305_v18, 3  ;;  %v313_v24 = vrot.slane %v305_v18, 4  ;;  %v314_v25 = vrot.slane %v305_v18, 5  ;;  %v315_v26 = vrot.slane %v305_v18, 6 }
 0x165   :  { %v324_v27 = vadd.f32 %v309_v19, %v1434_v41  ;;  %v326_v28 = vadd.f32 %v310_v20, %v1431_v39  ;;  %v327_v29 = vadd.f32 %v311_v22, %v1438_v45  ;;  %927 = vtanh.f32 %v325_v21 }
 0x166   :  { %v328_v30 = vadd.f32 %v312_v23, %v1436_v43  ;;  %v329_v31 = vadd.f32 %v313_v24, %v1441_v47  ;;  %v330_v32 = vadd.f32 %v314_v25, %v1443_v51  ;;  %v331_v33 = vadd.f32 %v315_v26, %v1449_v61 }
 0x167   :  { %929 = vtanh.f32 %v324_v27 }
 0x168   :  { %931 = vtanh.f32 %v326_v28 }
 0x169   :  { %933 = vtanh.f32 %v327_v29 }
 0x16a   :  { %935 = vtanh.f32 %v328_v30 }
 0x16b   :  { %937 = vtanh.f32 %v329_v31  ;;  %v928_v34 = vpop.eup %927 }
 0x16c   :  { %939 = vtanh.f32 %v330_v32 }
 0x16d   :  { %v930_v36 = vpop.eup %929  ;;  %941 = vtanh.f32 %v331_v33 }
 0x16e   :  { %v932_v37 = vpop.eup %931  ;;  %v348_v38 = vrot.slane %v930_v36, 1 }
 0x16f   :  { %v934_v40 = vpop.eup %933  ;;  %v350_v42 = vrot.slane %v932_v37, 7 }
 0x170   :  { %v936_v44 = vpop.eup %935  ;;  %v349_v46 = vsel %vm267_vm1, %v928_v34, %v348_v38  ;;  %v352_v48 = vrot.slane %v934_v40, 6 }
 0x171   :  { %v938_v49 = vpop.eup %937  ;;  %v351_v50 = vsel %vm270_vm2, %v350_v42, %v349_v46  ;;  %v354_v52 = vrot.slane %v936_v44, 5 }
 0x172   :  { %v940_v53 = vpop.eup %939  ;;  %v353_v54 = vsel %vm273_vm3, %v352_v48, %v351_v50  ;;  %v356_v55 = vrot.slane %v938_v49, 4 }
 0x173   :  { %v942_v56 = vpop.eup %941  ;;  %v355_v57 = vsel %vm276_vm4, %v354_v52, %v353_v54  ;;  %v358_v58 = vrot.slane %v940_v53, 3 }
 0x174   :  { %v357_v59 = vsel %vm279_vm5, %v356_v55, %v355_v57  ;;  %v360_v60 = vrot.slane %v942_v56, 2 }
 0x175   :  { %v359_v62 = vsel %vm282_vm6, %v358_v58, %v357_v59 }
 0x176   :  { %v361_v63 = vsel %vm285_vm7, %v360_v60, %v359_v62 }
 0x177   :  { %379 = vmatmul.f32.vlgmr.msra.gmra.mxu3 %v361_v63 }
 0x1fa   :  { %v380_v0 = vpop.f32.mrf.mxu3 }
 0x1fb   :  { %v384_v1 = vrot.slane %v380_v0, 6  ;;  %v385_v2 = vrot.slane %v380_v0, 7  ;;  %v401_v3 = vadd.f32 %v380_v0, %v1431_v39  ;;  %v386_v4 = vrot.slane %v380_v0, 1 }
 0x1fc   :  { %v387_v5 = vrot.slane %v380_v0, 2  ;;  %v388_v6 = vrot.slane %v380_v0, 3  ;;  %v389_v7 = vrot.slane %v380_v0, 4  ;;  %v390_v10 = vrot.slane %v380_v0, 5 }
 0x1fd   :  { %v399_v8 = vadd.f32 %v384_v1, %v1434_v41  ;;  %v400_v9 = vadd.f32 %v385_v2, %v1428_v35  ;;  %v402_v11 = vadd.f32 %v386_v4, %v1438_v45  ;;  %943 = vtanh.f32 %v401_v3 }
 0x1fe   :  { %v403_v12 = vadd.f32 %v387_v5, %v1436_v43  ;;  %v404_v13 = vadd.f32 %v388_v6, %v1441_v47  ;;  %v405_v14 = vadd.f32 %v389_v7, %v1443_v51  ;;  %v406_v15 = vadd.f32 %v390_v10, %v1449_v61 }
 0x1ff   :  { %945 = vtanh.f32 %v399_v8 }
 0x200   :  { %947 = vtanh.f32 %v400_v9 }
 0x201   :  { %949 = vtanh.f32 %v402_v11 }
 0x202   :  { %951 = vtanh.f32 %v403_v12 }
 0x203   :  { %953 = vtanh.f32 %v404_v13  ;;  %v944_v16 = vpop.eup %943 }
 0x204   :  { %955 = vtanh.f32 %v405_v14 }
 0x205   :  { %v946_v17 = vpop.eup %945  ;;  %957 = vtanh.f32 %v406_v15 }
 0x206   :  { %v948_v18 = vpop.eup %947  ;;  %v423_v19 = vrot.slane %v946_v17, 2 }
 0x207   :  { %v950_v20 = vpop.eup %949  ;;  %v424_v21 = vrot.slane %v948_v18, 1 }
 0x208   :  { %v952_v22 = vpop.eup %951  ;;  %v427_v25 = vrot.slane %v950_v20, 7 }
 0x209   :  { %v954_v23 = vpop.eup %953  ;;  %v425_v24 = vsel %vm267_vm1, %v424_v21, %v423_v19  ;;  %v429_v28 = vrot.slane %v952_v22, 6 }
 0x20a   :  { %v956_v26 = vpop.eup %955  ;;  %v426_v27 = vsel %vm270_vm2, %v944_v16, %v425_v24  ;;  %v431_v31 = vrot.slane %v954_v23, 5 }
 0x20b   :  { %v958_v29 = vpop.eup %957  ;;  %v428_v30 = vsel %vm273_vm3, %v427_v25, %v426_v27  ;;  %v433_v33 = vrot.slane %v956_v26, 4 }
 0x20c   :  { %v430_v32 = vsel %vm276_vm4, %v429_v28, %v428_v30  ;;  %v435_v36 = vrot.slane %v958_v29, 3 }
 0x20d   :  { %v432_v34 = vsel %vm279_vm5, %v431_v31, %v430_v32 }
 0x20e   :  { %v434_v37 = vsel %vm282_vm6, %v433_v33, %v432_v34 }
 0x20f   :  { %v436_v38 = vsel %vm285_vm7, %v435_v36, %v434_v37 }
 0x210   :  { %454 = vmatmul.f32.vlgmr.msrb.gmra.mxu1 %v436_v38 }
 0x28d   :  { %v455_v40 = vpop.f32.mrf.mxu1 }
 0x28e   :  { %v459_v42 = vrot.slane %v455_v40, 5  ;;  %v460_v44 = vrot.slane %v455_v40, 6  ;;  %v461_v46 = vrot.slane %v455_v40, 7  ;;  %v477_v48 = vadd.f32 %v455_v40, %v1438_v45 }
 0x28f   :  { %v462_v49 = vrot.slane %v455_v40, 1  ;;  %v463_v50 = vrot.slane %v455_v40, 2  ;;  %v464_v52 = vrot.slane %v455_v40, 3  ;;  %v465_v55 = vrot.slane %v455_v40, 4 }
 0x290   :  { %v474_v53 = vadd.f32 %v459_v42, %v1434_v41  ;;  %v475_v54 = vadd.f32 %v460_v44, %v1428_v35  ;;  %v476_v56 = vadd.f32 %v461_v46, %v1431_v39  ;;  %959 = vtanh.f32 %v477_v48 }
 0x291   :  { %v478_v57 = vadd.f32 %v462_v49, %v1436_v43  ;;  %v479_v58 = vadd.f32 %v463_v50, %v1441_v47  ;;  %v480_v59 = vadd.f32 %v464_v52, %v1443_v51  ;;  %v481_v60 = vadd.f32 %v465_v55, %v1449_v61 }
 0x292   :  { %961 = vtanh.f32 %v474_v53 }
 0x293   :  { %963 = vtanh.f32 %v475_v54 }
 0x294   :  { %965 = vtanh.f32 %v476_v56 }
 0x295   :  { %967 = vtanh.f32 %v478_v57 }
 0x296   :  { %969 = vtanh.f32 %v479_v58  ;;  %v960_v62 = vpop.eup %959 }
 0x297   :  { %971 = vtanh.f32 %v480_v59 }
 0x298   :  { %v962_v63 = vpop.eup %961  ;;  %973 = vtanh.f32 %v481_v60 }
 0x299   :  { %v964_v0 = vpop.eup %963  ;;  %v498_v1 = vrot.slane %v962_v63, 3 }
 0x29a   :  { %v966_v2 = vpop.eup %965  ;;  %v499_v3 = vrot.slane %v964_v0, 2 }
 0x29b   :  { %v968_v4 = vpop.eup %967  ;;  %v501_v5 = vrot.slane %v966_v2, 1 }
 0x29c   :  { %v970_v6 = vpop.eup %969  ;;  %v500_v7 = vsel %vm267_vm1, %v499_v3, %v498_v1  ;;  %v504_v10 = vrot.slane %v968_v4, 7 }
 0x29d   :  { %v972_v8 = vpop.eup %971  ;;  %v502_v9 = vsel %vm270_vm2, %v501_v5, %v500_v7  ;;  %v506_v13 = vrot.slane %v970_v6, 6 }
 0x29e   :  { %v974_v11 = vpop.eup %973  ;;  %v503_v12 = vsel %vm273_vm3, %v960_v62, %v502_v9  ;;  %v508_v15 = vrot.slane %v972_v8, 5 }
 0x29f   :  { %v505_v14 = vsel %vm276_vm4, %v504_v10, %v503_v12  ;;  %v510_v17 = vrot.slane %v974_v11, 4 }
 0x2a0   :  { %v507_v16 = vsel %vm279_vm5, %v506_v13, %v505_v14 }
 0x2a1   :  { %v509_v18 = vsel %vm282_vm6, %v508_v15, %v507_v16 }
 0x2a2   :  { %v511_v19 = vsel %vm285_vm7, %v510_v17, %v509_v18 }
 0x2a3   :  { %529 = vmatmul.f32.vlgmr.msrb.gmra.mxu2 %v511_v19 }
 0x326   :  { %v530_v20 = vpop.f32.mrf.mxu2 }
 0x327   :  { %v534_v21 = vrot.slane %v530_v20, 4  ;;  %v535_v22 = vrot.slane %v530_v20, 5  ;;  %v536_v23 = vrot.slane %v530_v20, 6  ;;  %v553_v24 = vadd.f32 %v530_v20, %v1436_v43 }
 0x328   :  { %v537_v25 = vrot.slane %v530_v20, 7  ;;  %v538_v26 = vrot.slane %v530_v20, 1  ;;  %v539_v27 = vrot.slane %v530_v20, 2  ;;  %v540_v30 = vrot.slane %v530_v20, 3 }
 0x329   :  { %v549_v28 = vadd.f32 %v534_v21, %v1434_v41  ;;  %v550_v29 = vadd.f32 %v535_v22, %v1428_v35  ;;  %v551_v31 = vadd.f32 %v536_v23, %v1431_v39  ;;  %975 = vtanh.f32 %v553_v24 }
 0x32a   :  { %v552_v32 = vadd.f32 %v537_v25, %v1438_v45  ;;  %v554_v33 = vadd.f32 %v538_v26, %v1441_v47  ;;  %v555_v34 = vadd.f32 %v539_v27, %v1443_v51  ;;  %v556_v36 = vadd.f32 %v540_v30, %v1449_v61 }
 0x32b   :  { %977 = vtanh.f32 %v549_v28 }
 0x32c   :  { %979 = vtanh.f32 %v550_v29 }
 0x32d   :  { %981 = vtanh.f32 %v551_v31 }
 0x32e   :  { %983 = vtanh.f32 %v552_v32 }
 0x32f   :  { %985 = vtanh.f32 %v554_v33  ;;  %v976_v37 = vpop.eup %975 }
 0x330   :  { %987 = vtanh.f32 %v555_v34 }
 0x331   :  { %v978_v38 = vpop.eup %977  ;;  %989 = vtanh.f32 %v556_v36 }
 0x332   :  { %v980_v40 = vpop.eup %979  ;;  %v573_v42 = vrot.slane %v978_v38, 4 }
 0x333   :  { %v982_v44 = vpop.eup %981  ;;  %v574_v46 = vrot.slane %v980_v40, 3 }
 0x334   :  { %v984_v48 = vpop.eup %983  ;;  %v576_v49 = vrot.slane %v982_v44, 2  ;;  %v833_v44 = vld [vmem:[#allocation11 + $0x78] sm:$0xff] }
 0x335   :  { %v986_v50 = vpop.eup %985  ;;  %v575_v52 = vsel %vm267_vm1, %v574_v46, %v573_v42  ;;  %v578_v53 = vrot.slane %v984_v48, 1  ;;  %v832_v46 = vld [vmem:[#allocation11 + $0x70] sm:$0xff]  ;;  %853 = vmatpush.msra.mxu2 %v833_v44  ;;  %v831_v48 = vld [vmem:[#allocation11 + $0x68] sm:$0xff] }
 0x336   :  { %v988_v54 = vpop.eup %987  ;;  %v577_v55 = vsel %vm270_vm2, %v576_v49, %v575_v52  ;;  %v581_v58 = vrot.slane %v986_v50, 7  ;;  %v830_v49 = vld [vmem:[#allocation11 + $0x60] sm:$0xff]  ;;  %v829_v50 = vld [vmem:[#allocation11 + $0x58] sm:$0xff] }
 0x337   :  { %v990_v56 = vpop.eup %989  ;;  %v579_v57 = vsel %vm273_vm3, %v578_v53, %v577_v55  ;;  %v583_v60 = vrot.slane %v988_v54, 6  ;;  %854 = vmatpush.msra.mxu2 %v832_v46 }
 0x338   :  { %v580_v59 = vsel %vm276_vm4, %v976_v37, %v579_v57  ;;  %v585_v63 = vrot.slane %v990_v56, 5 }
 0x339   :  { %v582_v62 = vsel %vm279_vm5, %v581_v58, %v580_v59  ;;  %855 = vmatpush.msra.mxu2 %v831_v48 }
 0x33a   :  { %v584_v0 = vsel %vm282_vm6, %v583_v60, %v582_v62 }
 0x33b   :  { %v586_v1 = vsel %vm285_vm7, %v585_v63, %v584_v0  ;;  %856 = vmatpush.msra.mxu2 %v830_v49 }
 0x33c   :  { %604 = vmatmul.f32.vlgmr.msrb.gmra.mxu3 %v586_v1 }
 0x33d   :  { %857 = vmatpush.msra.mxu2 %v829_v50 }
 0x3bf   :  { %v605_v2 = vpop.f32.mrf.mxu3 }
 0x3c0   :  { %v609_v3 = vrot.slane %v605_v2, 3  ;;  %v610_v4 = vrot.slane %v605_v2, 4  ;;  %v611_v5 = vrot.slane %v605_v2, 5  ;;  %v612_v6 = vrot.slane %v605_v2, 6 }
 0x3c1   :  { %v613_v7 = vrot.slane %v605_v2, 7  ;;  %v614_v8 = vrot.slane %v605_v2, 1  ;;  %v615_v12 = vrot.slane %v605_v2, 2  ;;  %v629_v17 = vadd.f32 %v605_v2, %v1441_v47 }
 0x3c2   :  { %v624_v9 = vadd.f32 %v609_v3, %v1434_v41  ;;  %v625_v10 = vadd.f32 %v610_v4, %v1428_v35  ;;  %v626_v11 = vadd.f32 %v611_v5, %v1431_v39  ;;  %v627_v13 = vadd.f32 %v612_v6, %v1438_v45 }
 0x3c3   :  { %v628_v14 = vadd.f32 %v613_v7, %v1436_v43  ;;  %v630_v15 = vadd.f32 %v614_v8, %v1443_v51  ;;  %v631_v16 = vadd.f32 %v615_v12, %v1449_v61 }
 0x3c4   :  { %991 = vtanh.f32 %v624_v9 }
 0x3c5   :  { %993 = vtanh.f32 %v625_v10 }
 0x3c6   :  { %995 = vtanh.f32 %v626_v11 }
 0x3c7   :  { %997 = vtanh.f32 %v627_v13 }
 0x3c8   :  { %999 = vtanh.f32 %v628_v14 }
 0x3c9   :  { %1001 = vtanh.f32 %v630_v15 }
 0x3ca   :  { %v992_v18 = vpop.eup %991  ;;  %1003 = vtanh.f32 %v631_v16 }
 0x3cb   :  { %v994_v19 = vpop.eup %993  ;;  %1005 = vtanh.f32 %v629_v17  ;;  %v648_v20 = vrot.slane %v992_v18, 5 }
 0x3cc   :  { %v996_v21 = vpop.eup %995  ;;  %v649_v22 = vrot.slane %v994_v19, 4 }
 0x3cd   :  { %v998_v23 = vpop.eup %997  ;;  %v651_v24 = vrot.slane %v996_v21, 3 }
 0x3ce   :  { %v1000_v25 = vpop.eup %999  ;;  %v650_v26 = vsel %vm267_vm1, %v649_v22, %v648_v20  ;;  %v653_v27 = vrot.slane %v998_v23, 2 }
 0x3cf   :  { %v1002_v28 = vpop.eup %1001  ;;  %v652_v29 = vsel %vm270_vm2, %v651_v24, %v650_v26  ;;  %v655_v30 = vrot.slane %v1000_v25, 1 }
 0x3d0   :  { %v1004_v31 = vpop.eup %1003  ;;  %v654_v32 = vsel %vm273_vm3, %v653_v27, %v652_v29  ;;  %v658_v36 = vrot.slane %v1002_v28, 7  ;;  %v828_v27 = vld [vmem:[#allocation11 + $0x50] sm:$0xff]  ;;  %v827_v28 = vld [vmem:[#allocation11 + $0x48] sm:$0xff]  ;;  %v826_v29 = vld [vmem:[#allocation11 + $0x40] sm:$0xff] }
 0x3d1   :  { %v1006_v33 = vpop.eup %1005  ;;  %v656_v34 = vsel %vm276_vm4, %v655_v30, %v654_v32  ;;  %v660_v38 = vrot.slane %v1004_v31, 6  ;;  %858 = vmatpush.msra.mxu2 %v828_v27  ;;  %v825_v30 = vld [vmem:[#allocation11 + $0x38] sm:$0xff]  ;;  %v824_v31 = vld [vmem:[#allocation11 + $0x30] sm:$0xff]  ;;  %v823_v32 = vld [vmem:[#allocation11 + $0x28] sm:$0xff] }
 0x3d2   :  { %v657_v37 = vsel %vm279_vm5, %v1006_v33, %v656_v34  ;;  %v822_v33 = vld [vmem:[#allocation11 + $0x20] sm:$0xff]  ;;  %v821_v34 = vld [vmem:[#allocation11 + $0x18] sm:$0xff] }
 0x3d3   :  { %v659_v40 = vsel %vm282_vm6, %v658_v36, %v657_v37  ;;  %859 = vmatpush.msra.mxu2 %v827_v28  ;;  %v820_v36 = vld [vmem:[#allocation11 + $0x10] sm:$0xff]  ;;  %v819_v37 = vld [vmem:[#allocation11 + $0x8] sm:$0xff] }
 0x3d4   :  { %v661_v42 = vsel %vm285_vm7, %v660_v38, %v659_v40  ;;  %v818_v38 = vld [vmem:[#allocation11] sm:$0xff] }
 0x3d5   :  { %679 = vmatmul.f32.vlgmr.msrb.gmra.mxu0 %v661_v42  ;;  %860 = vmatpush.msra.mxu2 %v826_v29 }
 0x3d7   :  { %861 = vmatpush.msra.mxu2 %v825_v30 }
 0x3d9   :  { %862 = vmatpush.msra.mxu2 %v824_v31 }
 0x3db   :  { %863 = vmatpush.msra.mxu2 %v823_v32 }
 0x3dd   :  { %864 = vmatpush.msra.mxu2 %v822_v33 }
 0x3df   :  { %865 = vmatpush.msra.mxu2 %v821_v34 }
 0x3e1   :  { %866 = vmatpush.msra.mxu2 %v820_v36 }
 0x3e3   :  { %867 = vmatpush.msra.mxu2 %v819_v37 }
 0x3e5   :  { %868 = vmatpush.msra.mxu2 %v818_v38 }
 0x452   :  { %v680_v52 = vpop.f32.mrf.mxu0 }
 0x453   :  { %v684_v53 = vrot.slane %v680_v52, 2  ;;  %v685_v54 = vrot.slane %v680_v52, 3  ;;  %v686_v55 = vrot.slane %v680_v52, 4  ;;  %v687_v56 = vrot.slane %v680_v52, 5 }
 0x454   :  { %v688_v57 = vrot.slane %v680_v52, 6  ;;  %v689_v58 = vrot.slane %v680_v52, 7  ;;  %v690_v63 = vrot.slane %v680_v52, 1  ;;  %v705_v4 = vadd.f32 %v680_v52, %v1443_v51 }
 0x455   :  { %v699_v59 = vadd.f32 %v684_v53, %v1434_v41  ;;  %v700_v60 = vadd.f32 %v685_v54, %v1428_v35  ;;  %v701_v62 = vadd.f32 %v686_v55, %v1431_v39  ;;  %v702_v0 = vadd.f32 %v687_v56, %v1438_v45 }
 0x456   :  { %v703_v1 = vadd.f32 %v688_v57, %v1436_v43  ;;  %v704_v2 = vadd.f32 %v689_v58, %v1441_v47  ;;  %v706_v3 = vadd.f32 %v690_v63, %v1449_v61 }
 0x457   :  { %1007 = vtanh.f32 %v699_v59 }
 0x458   :  { %1009 = vtanh.f32 %v700_v60 }
 0x459   :  { %1011 = vtanh.f32 %v701_v62 }
 0x45a   :  { %1013 = vtanh.f32 %v702_v0 }
 0x45b   :  { %1015 = vtanh.f32 %v703_v1 }
 0x45c   :  { %1017 = vtanh.f32 %v704_v2 }
 0x45d   :  { %v1008_v5 = vpop.eup %1007  ;;  %1019 = vtanh.f32 %v706_v3 }
 0x45e   :  { %v1010_v6 = vpop.eup %1009  ;;  %v723_v7 = vrot.slane %v1008_v5, 6  ;;  %1021 = vtanh.f32 %v705_v4 }
 0x45f   :  { %v1012_v8 = vpop.eup %1011  ;;  %v724_v9 = vrot.slane %v1010_v6, 5 }
 0x460   :  { %v1014_v10 = vpop.eup %1013  ;;  %v726_v11 = vrot.slane %v1012_v8, 4 }
 0x461   :  { %v1016_v12 = vpop.eup %1015  ;;  %v725_v13 = vsel %vm267_vm1, %v724_v9, %v723_v7  ;;  %v728_v14 = vrot.slane %v1014_v10, 3 }
 0x462   :  { %v1018_v15 = vpop.eup %1017  ;;  %v727_v16 = vsel %vm270_vm2, %v726_v11, %v725_v13  ;;  %v730_v17 = vrot.slane %v1016_v12, 2  ;;  %v910_v12 = vld [vmem:[%s1576_s6] ss:$0 sm:$0xff] }
 0x463   :  { %v1020_v18 = vpop.eup %1019  ;;  %v729_v19 = vsel %vm273_vm3, %v728_v14, %v727_v16  ;;  %v732_v20 = vrot.slane %v1018_v15, 1 }
 0x464   :  { %v731_v21 = vsel %vm276_vm4, %v730_v17, %v729_v19  ;;  %v1022_v22 = vpop.eup %1021  ;;  %v735_v24 = vrot.slane %v1020_v18, 7 }
 0x465   :  { %v733_v23 = vsel %vm279_vm5, %v732_v20, %v731_v21 }
 0x466   :  { %v734_v25 = vsel %vm282_vm6, %v1022_v22, %v733_v23 }
 0x467   :  { %v736_v26 = vsel %vm285_vm7, %v735_v24, %v734_v25 }
 0x468   :  { %754 = vmatmul.f32.vlgmr.msra.gmra.mxu1 %v736_v26 }
 0x4e5   :  { %v755_v40 = vpop.f32.mrf.mxu1 }
 0x4e6   :  { %v759_v42 = vrot.slane %v755_v40, 1  ;;  %v760_v44 = vrot.slane %v755_v40, 2  ;;  %v761_v46 = vrot.slane %v755_v40, 3  ;;  %v762_v48 = vrot.slane %v755_v40, 4 }
 0x4e7   :  { %v763_v49 = vrot.slane %v755_v40, 5  ;;  %v764_v50 = vrot.slane %v755_v40, 6  ;;  %v781_v52 = vadd.f32 %v755_v40, %v1449_v61  ;;  %v765_v53 = vrot.slane %v755_v40, 7 }
 0x4e8   :  { %v774_v54 = vadd.f32 %v759_v42, %v1434_v41  ;;  %v775_v55 = vadd.f32 %v760_v44, %v1428_v35  ;;  %v776_v56 = vadd.f32 %v761_v46, %v1431_v39  ;;  %v777_v57 = vadd.f32 %v762_v48, %v1438_v45 }
 0x4e9   :  { %1023 = vtanh.f32 %v781_v52  ;;  %v778_v58 = vadd.f32 %v763_v49, %v1436_v43  ;;  %v779_v59 = vadd.f32 %v764_v50, %v1441_v47  ;;  %v780_v60 = vadd.f32 %v765_v53, %v1443_v51 }
 0x4ea   :  { %1025 = vtanh.f32 %v774_v54 }
 0x4eb   :  { %1027 = vtanh.f32 %v775_v55 }
 0x4ec   :  { %1029 = vtanh.f32 %v776_v56 }
 0x4ed   :  { %1031 = vtanh.f32 %v777_v57 }
 0x4ee   :  { %1033 = vtanh.f32 %v778_v58 }
 0x4ef   :  { %v1024_v61 = vpop.eup %1023  ;;  %1035 = vtanh.f32 %v779_v59 }
 0x4f0   :  { %v1026_v41 = vpop.eup %1025  ;;  %1037 = vtanh.f32 %v780_v60 }
 0x4f1   :  { %v1028_v35 = vpop.eup %1027  ;;  %v838_v39 = vrot.slane %v1026_v41, 7 }
 0x4f2   :  { %v1030_v62 = vpop.eup %1029  ;;  %v839_v45 = vrot.slane %v1028_v35, 6 }
 0x4f3   :  { %v1032_v63 = vpop.eup %1031  ;;  %v841_v0 = vrot.slane %v1030_v62, 5 }
 0x4f4   :  { %v1034_v43 = vpop.eup %1033  ;;  %v840_v1 = vsel %vm267_vm1, %v839_v45, %v838_v39  ;;  %v843_v47 = vrot.slane %v1032_v63, 4 }
 0x4f5   :  { %v1036_v2 = vpop.eup %1035  ;;  %v842_v51 = vsel %vm270_vm2, %v841_v0, %v840_v1  ;;  %v845_v3 = vrot.slane %v1034_v43, 3 }
 0x4f6   :  { %v1038_v4 = vpop.eup %1037  ;;  %v844_v5 = vsel %vm273_vm3, %v843_v47, %v842_v51  ;;  %v847_v6 = vrot.slane %v1036_v2, 2 }
 0x4f7   :  { %v846_v7 = vsel %vm276_vm4, %v845_v3, %v844_v5  ;;  %v849_v8 = vrot.slane %v1038_v4, 1 }
 0x4f8   :  { %v848_v9 = vsel %vm279_vm5, %v847_v6, %v846_v7 }
 0x4f9   :  { %v850_v10 = vsel %vm282_vm6, %v849_v8, %v848_v9 }
 0x4fa   :  { %v851_v11 = vsel %vm285_vm7, %v1024_v61, %v850_v10 }
 0x4fb   :  { %869 = vmatmul.f32.vlgmr.msra.gmra.mxu2 %v851_v11 }
 0x57e   :  { %v870_v13 = vpop.f32.mrf.mxu2 }
 0x57f   :  { %v871_v14 = vadd.f32 %v910_v12, %v870_v13 }
 0x581   :  { %873 = vst [vmem:[#allocation12] sm:$0xff] %v871_v14 }
 0x582   :  { %884 = dma.vmem_to_hbm [thread:$0]  %s880_s27, 128, %s882_s30, [#allocation5]  }
 0x583   :  { %1189 = dma.done.wait [#allocation5], 128  }
 0x584   :  { %1190 = vsyncadd [#allocation5], 4294967168 }
 0x585   :  { %889 = vsyncpa [#allocation4], 1 }
 0x586   :  { %890 = vsyncpa [#allocation7], 1 }
 0x587   :  { %891 = vsyncpa [#allocation10], 1 }
 0x588   :  { %892 = vsyncpa [#allocation5], 1 }

</bundles_post_ra>
